<compile_context>
chip_gen: v6e
topology: v6e:2x2x1
jax: 0.10.0
libtpu: 0.0.40
codegen_flags: <defaults>
</compile_context>

<pallas_src>
import jax
import jax.numpy as jnp
from jax.experimental import pallas as pl
from jax.experimental.pallas import tpu as pltpu


def _round_up(n: int, m: int) -> int:
    return ((n + m - 1) // m) * m


def _mlp_kernel(x_ref, w1_ref, b1w2_ref, b2_ref, o_ref):
    # x_ref   : (TB, D)  activation tile, straight from the (B, D) input
    # w1_ref  : (H, D)   first-layer weights (torch nn.Linear layout), resident
    # b1w2_ref: (H, 2)   packed [b1 | w2] columns, resident
    # b2_ref  : SMEM (1,) scalar
    # o_ref   : (1, TB)  lane-dense output tile
    xt = jnp.transpose(x_ref[...])                       # (D, TB) in-VMEM (XLU)
    # Layer 1 on the MXU: (H, D) @ (D, TB) -> (H, TB), f32 accumulation.
    h = jnp.dot(w1_ref[...], xt, preferred_element_type=jnp.float32)
    h = jnp.maximum(h + b1w2_ref[:, 0:1], 0.0)            # bias + ReLU (VPU)
    # Layer 2 (out_features == 1): VPU multiply + sublane reduce over H.
    z = jnp.sum(h * b1w2_ref[:, 1:2], axis=0, keepdims=True) + b2_ref[0]  # (1, TB)
    o_ref[...] = jax.nn.sigmoid(z)                        # EUP path


def mlp_forward(x, w1, b1, w2, b2, *, batch_tile=None):
    """Forward pass of NN(input_dim, hidden_dim).

    x : (B, D)
    w1: (H, D), b1: (H,)   -- torch nn.Linear layout (out_features, in_features)
    w2: (1, H), b2: (1,)
    Returns (B, 1) float32.
    """
    B, D = x.shape
    H, D2 = w1.shape
    assert D2 == D and w2.shape == (1, H) and b1.shape == (H,) and b2.shape == (1,)

    if batch_tile is None:
        if B <= 1024:
            # Tiny batch: one exact full-array block, zero padding / OOB.
            batch_tile = B
        else:
            # ~0.5 MB of f32 x per step (amortizes ~0.35us/step overhead) while
            # keeping >= 2 grid steps so both v7x TensorCores can take work.
            batch_tile = min(8192, _round_up((B + 1) // 2, 128))
    assert batch_tile == B or batch_tile % 128 == 0

    grid_steps = (B + batch_tile - 1) // batch_tile

    # bf16 x-stream only when x already lives in bf16 (halves the dominant HBM
    # stream for free); never add a standalone f32->bf16 cast pass.
    in_dtype = jnp.bfloat16 if x.dtype == jnp.dtype(jnp.bfloat16) else jnp.float32
    x_in = x if x.dtype == in_dtype else x.astype(in_dtype)
    w1_in = w1 if w1.dtype == in_dtype else w1.astype(in_dtype)

    # Pack b1 and w2 into one small resident operand: column 0 = b1, column 1 = w2.
    b1w2 = jnp.stack(
        [b1.astype(jnp.float32), w2[0].astype(jnp.float32)], axis=1)      # (H, 2)
    b2_s = b2.reshape(1).astype(jnp.float32)                              # SMEM scalar

    n_pad = grid_steps * batch_tile
    itemsize = jnp.dtype(in_dtype).itemsize
    cost = pl.CostEstimate(
        flops=2 * n_pad * D * H + 4 * n_pad * H,
        transcendentals=n_pad,
        bytes_accessed=n_pad * D * itemsize          # x (the only large stream)
        + H * D * itemsize                           # W1
        + 4 * (2 * H + 1)                            # b1/w2 pack, b2
        + 4 * B,                                     # output
    )

    out_row = pl.pallas_call(
        _mlp_kernel,
        out_shape=jax.ShapeDtypeStruct((1, B), jnp.float32),
        grid_spec=pltpu.PrefetchScalarGridSpec(
            num_scalar_prefetch=0,
            grid=(grid_steps,),
            in_specs=[
                pl.BlockSpec((batch_tile, D), lambda i: (i, 0)),    # x tile (B, D)
                pl.BlockSpec((H, D), lambda i: (0, 0)),             # W1 (resident)
                pl.BlockSpec((H, 2), lambda i: (0, 0)),             # [b1 | w2] (resident)
                pl.BlockSpec(memory_space=pltpu.MemorySpace.SMEM),  # b2 scalar in SMEM
            ],
            out_specs=pl.BlockSpec((1, batch_tile), lambda i: (0, i)),  # lane-dense out
        ),
        compiler_params=pltpu.CompilerParams(
            # NOTE: pltpu.CORE_PARALLEL could be tried here on v7x for guaranteed
            # cross-TC sharding of the batch axis; "parallel" is kept for safety.
            dimension_semantics=("parallel",),
            vmem_limit_bytes=32 * 1024 * 1024,
        ),
        cost_estimate=cost,
    )(x_in, w1_in, b1w2, b2_s)

    # (1, B) -> (B, 1): pure reshape (free), keeps the kernel's store lane-dense.
    return jnp.reshape(out_row, (B, 1))


def reference_forward(x, w1, b1, w2, b2):
    h = jnp.maximum(x @ w1.T + b1[None, :], 0.0)
    z = h @ w2.T + b2[None, :]
    return jax.nn.sigmoid(z)


if __name__ == "__main__":
    # Small shapes consistent with the module: NN(input_dim=16, hidden_dim=32)
    batch, input_dim, hidden_dim = 8, 16, 32

    key = jax.random.PRNGKey(0)
    kx, k1, kb1, k2, kb2, kx2, kx3 = jax.random.split(key, 7)

    # torch.nn.Linear-style layout and uniform init bounds.
    bound1 = 1.0 / (input_dim ** 0.5)
    bound2 = 1.0 / (hidden_dim ** 0.5)
    w1 = jax.random.uniform(k1, (hidden_dim, input_dim), jnp.float32, -bound1, bound1)
    b1 = jax.random.uniform(kb1, (hidden_dim,), jnp.float32, -bound1, bound1)
    w2 = jax.random.uniform(k2, (1, hidden_dim), jnp.float32, -bound2, bound2)
    b2 = jax.random.uniform(kb2, (1,), jnp.float32, -bound2, bound2)

    # Small batch: single exact grid step.
    x = jax.random.normal(kx, (batch, input_dim), jnp.float32)
    out = jax.block_until_ready(mlp_forward(x, w1, b1, w2, b2))
    ref = reference_forward(x, w1, b1, w2, b2)
    assert out.shape == (batch, 1)
    assert jnp.allclose(out, ref, atol=1e-5, rtol=1e-5)

    # Ragged batch (not a multiple of 8/128): still one exact full-array block.
    x_med = jax.random.normal(kx2, (300, input_dim), jnp.float32)
    out_med = jax.block_until_ready(mlp_forward(x_med, w1, b1, w2, b2))
    ref_med = reference_forward(x_med, w1, b1, w2, b2)
    assert out_med.shape == (300, 1)
    assert jnp.allclose(out_med, ref_med, atol=1e-5, rtol=1e-5)

    # Larger batch: exercises the multi-step pipelined grid (2 x 2048-row tiles,
    # sharded across TensorCores where available).
    x_big = jax.random.normal(kx3, (4096, input_dim), jnp.float32)
    out_big = jax.block_until_ready(mlp_forward(x_big, w1, b1, w2, b2))
    ref_big = reference_forward(x_big, w1, b1, w2, b2)
    assert out_big.shape == (4096, 1)
    assert jnp.allclose(out_big, ref_big, atol=1e-5, rtol=1e-5)

    # TODO(synk): set_weights / get_loss / get_gradient are host-side training
    # utilities of the module and are not part of this forward kernel.
    print("KERNEL_OK")
</pallas_src>

<mosaic_0001>
module attributes {stable_mosaic.version = 11 : i64} {
  func.func @_mlp_kernel(%arg0: i32, %arg1: memref<8x16xf32, #tpu.memory_space<vmem>>, %arg2: memref<32x16xf32, #tpu.memory_space<vmem>>, %arg3: memref<32x2xf32, #tpu.memory_space<vmem>>, %arg4: memref<1xf32, #tpu.memory_space<smem>>, %arg5: memref<1x8xf32, #tpu.memory_space<vmem>>) attributes {dimension_semantics = [#tpu.dimension_semantics<parallel>], iteration_bounds = array<i64: 1>, scalar_prefetch = 0 : i64, scratch_operands = 0 : i64, tpu.core_type = #tpu.core_type<tc>, window_params = [{transform_indices = @transform_0, window_bounds = array<i64: 8, 16>}, {pipeline_mode = #tpu.pipeline_mode<synchronous>, transform_indices = @transform_1, window_bounds = array<i64: 32, 16>}, {pipeline_mode = #tpu.pipeline_mode<synchronous>, transform_indices = @transform_2, window_bounds = array<i64: 32, 2>}, {transform_indices = @transform_3, window_bounds = array<i64: 1>}, {transform_indices = @transform_4, window_bounds = array<i64: 1, 8>}]} {
    %c0 = arith.constant 0 : index
    %c0_0 = arith.constant 0 : index
    %0 = vector.load %arg1[%c0, %c0_0] : memref<8x16xf32, #tpu.memory_space<vmem>>, vector<8x16xf32>
    %1 = tpu.transpose %0, [1, 0] : vector<8x16xf32> -> vector<16x8xf32>
    %c0_1 = arith.constant 0 : index
    %c0_2 = arith.constant 0 : index
    %2 = vector.load %arg2[%c0_1, %c0_2] : memref<32x16xf32, #tpu.memory_space<vmem>>, vector<32x16xf32>
    %cst = arith.constant dense<0.000000e+00> : vector<32x8xf32>
    %3 = tpu.matmul %2, %1, %cst {dimension_numbers = #tpu.dot_dimension_numbers<[1], [0], [0], [1], [0, 0, 1, 1], [], []>} : vector<32x16xf32>, vector<16x8xf32>, vector<32x8xf32> -> vector<32x8xf32>
    %c0_3 = arith.constant 0 : index
    %c0_4 = arith.constant 0 : index
    %4 = vector.load %arg3[%c0_3, %c0_4] : memref<32x2xf32, #tpu.memory_space<vmem>>, vector<32x1xf32>
    %5 = vector.broadcast %4 : vector<32x1xf32> to vector<32x8xf32>
    %6 = arith.addf %3, %5 : vector<32x8xf32>
    %cst_5 = arith.constant 0.000000e+00 : f32
    %7 = vector.broadcast %cst_5 : f32 to vector<32x8xf32>
    %8 = arith.maximumf %6, %7 : vector<32x8xf32>
    %c0_6 = arith.constant 0 : index
    %c1 = arith.constant 1 : index
    %9 = vector.load %arg3[%c0_6, %c1] : memref<32x2xf32, #tpu.memory_space<vmem>>, vector<32x1xf32>
    %10 = vector.broadcast %9 : vector<32x1xf32> to vector<32x8xf32>
    %11 = arith.mulf %8, %10 : vector<32x8xf32>
    %cst_7 = arith.constant dense<0.000000e+00> : vector<8xf32>
    %12 = vector.multi_reduction <add>, %11, %cst_7 [0] : vector<32x8xf32> to vector<8xf32>
    %13 = vector.shape_cast %12 : vector<8xf32> to vector<1x8xf32>
    %c0_8 = arith.constant 0 : index
    %14 = memref.load %arg4[%c0_8] : memref<1xf32, #tpu.memory_space<smem>>
    %15 = vector.broadcast %14 : f32 to vector<1x8xf32>
    %16 = arith.addf %13, %15 : vector<1x8xf32>
    %17 = arith.negf %16 : vector<1x8xf32>
    %18 = math.exp %17 : vector<1x8xf32>
    %cst_9 = arith.constant 1.000000e+00 : f32
    %19 = vector.broadcast %cst_9 : f32 to vector<1x8xf32>
    %20 = arith.addf %19, %18 : vector<1x8xf32>
    %21 = arith.divf %19, %20 : vector<1x8xf32>
    %c0_10 = arith.constant 0 : index
    %c0_11 = arith.constant 0 : index
    %22 = vector.load %arg5[%c0_10, %c0_11] : memref<1x8xf32, #tpu.memory_space<vmem>>, vector<1x8xf32>
    tpu.vector_store %arg5[%c0_10, %c0_11], %21 {strides = array<i32>} : memref<1x8xf32, #tpu.memory_space<vmem>>, vector<1x8xf32>,
    return
  }
  func.func @transform_0(%arg0: i32) -> (i32, i32) {
    %c0_i32 = arith.constant 0 : i32
    %c0_i32_0 = arith.constant 0 : i32
    return %arg0, %c0_i32 : i32, i32
  }
  func.func @transform_1(%arg0: i32) -> (i32, i32) {
    %c0_i32 = arith.constant 0 : i32
    %c0_i32_0 = arith.constant 0 : i32
    %c0_i32_1 = arith.constant 0 : i32
    return %c0_i32, %c0_i32_0 : i32, i32
  }
  func.func @transform_2(%arg0: i32) -> (i32, i32) {
    %c0_i32 = arith.constant 0 : i32
    %c0_i32_0 = arith.constant 0 : i32
    %c0_i32_1 = arith.constant 0 : i32
    return %c0_i32, %c0_i32_0 : i32, i32
  }
  func.func @transform_3(%arg0: i32) -> i32 {
    %c0_i32 = arith.constant 0 : i32
    %c0_i32_0 = arith.constant 0 : i32
    return %c0_i32 : i32
  }
  func.func @transform_4(%arg0: i32) -> (i32, i32) {
    %c0_i32 = arith.constant 0 : i32
    %c0_i32_0 = arith.constant 0 : i32
    return %c0_i32, %arg0 : i32, i32
  }
}

</mosaic_0001>

<bundles_post_ra>
// kernel: tpu_custom_call.1
= control target key start
LH: loop header
LB: loop body
LE: loop exit
PB: predicated region body
PF: predicated region fallthrough
CT: control target
= control target key end

     0   :  { %vm48_vm0 = vcmask 130048   ;;  %s335_s0 = inlined_call_operand.vmem [shape: f32[8,16], index: 0, kind: input, shape index: {}]   ;;  %s336_s1 = inlined_call_operand.vmem [shape: f32[32,16], index: 1, kind: input, shape index: {}]   ;;  %s337_s2 = inlined_call_operand.vmem [shape: f32[32,2], index: 2, kind: input, shape index: {}]   ;;  %s338_s3 = inlined_call_operand.<no memory space> [shape: f32[1], index: 3, kind: input, shape index: {}]   ;;  %s339_s4 = inlined_call_operand.hbm [shape: f32[1,8], index: 4, kind: output, shape index: {}]  }
   0x1   :  { %v19_v0 = vld [vmem:[%s335_s0] sm:$0xff]  ;;  %v22_v2 = vld [vmem:[%s336_s1 + $0x10] sm:$0xff]  ;;  %v21_v3 = vld [vmem:[%s336_s1 + $0x8] sm:$0xff] }
   0x2   :  { %v20_v1 = vld [vmem:[%s336_s1] sm:$0xff]  ;;  %223 = vmatprep.subr.msk.mxu0 %vm48_vm0, %v19_v0  ;;  %231 = vmatprep.subr.msk.mxu1 %vm48_vm0, %v19_v0  ;;  %v23_v4 = vld [vmem:[%s336_s1 + $0x18] sm:$0xff]  ;;  %v26_v5 = vld [vmem:[%s337_s2 + $0x10] sm:$0xff] }
   0x3   :  { %224 = vmatpush3.xpose.msk.msra.mxu0 %vm48_vm0, %v19_v0  ;;  %232 = vmatpush3.xpose.msk.msra.mxu1 %vm48_vm0, %v19_v0  ;;  %v24_v6 = vld [vmem:[%s337_s2] sm:$0xff] }
   0x4   :  { %225 = vmatprep.mubr.msk.f32.mxu0 %vm48_vm0, %v20_v1  ;;  %228 = vmatprep.mubr.msk.f32.mxu1 %vm48_vm0, %v22_v2 }
   0x5   :  { %10 = vsyncpa [#allocation4], 0  ;;  %v266_v7 = vmov 0   ;;  %v27_v8 = vld [vmem:[%s337_s2 + $0x18] sm:$0xff]  ;;  %v25_v9 = vld [vmem:[%s337_s2 + $0x8] sm:$0xff]  ;;  %v267_v10 = vmov 1   ;;  %v188_v47 = vstv %s338_s3 }
   0x6   :  { %237 = vset.pattern.permute.xlu1 %v266_v7  ;;  %236 = vset.pattern.permute.xlu0 %v266_v7  ;;  %vm173_vm1 = vcmask 64512   ;;  %s268_s6 = smov [#allocation3]   ;;  %vm196_vm2 = vcmask 57344  }
   0x7   :  { %226 = vmatmul.mubr.msk.f32.vlgmr.msra.gmra.mxu0 %vm48_vm0, %v21_v3  ;;  %229 = vmatmul.mubr.msk.f32.vlgmr.msra.gmra.mxu1 %vm48_vm0, %v23_v4  ;;  %s204_s7 = sshll.u32 %s268_s6, 4  ;;  %s205_s7 = int_to_ptr.vmem [resolvable:$true] %s204_s7 }
   0x8   :  { %40 = vperm.xlu1 %237, %v26_v5   ;;  %30 = vperm.xlu0 %236, %v24_v6   ;;  %s244_s8 = scalar_lea.vmem %s205_s7, 16  ;;  %s248_s9 = scalar_lea.vmem %s205_s7, 32 }
   0x9   :  { %p245_p0 = scmp.ne.s32.totalorder %s205_s7, %s244_s8  ;;  %p249_p1 = scmp.lt.s32.totalorder %s205_s7, %s205_s7 }
   0xa   :  { %p250_p2 = scmp.lt.s32.totalorder %s248_s9, %s244_s8 }
   0xc   :  { %45 = vperm.xlu1 %237, %v27_v8   ;;  %35 = vperm.xlu0 %236, %v25_v9   ;;  %p251_p3 = por %p250_p2, %p249_p1 }
   0xe   :  { %p252_p4 = pnand %p251_p3, %p245_p0 }
  0x10   :  { %239 = vset.pattern.permute.xlu1 %v267_v10  ;;  %238 = vset.pattern.permute.xlu0 %v267_v10 }
  0x11   :  { %158 = vperm.xlu1 %239, %v25_v9   ;;  %154 = vperm.xlu0 %238, %v24_v6  }
  0x15   :  { %162 = vperm.xlu1 %239, %v26_v5   ;;  %166 = vperm.xlu0 %238, %v27_v8  }
  0x83   :  { %v41_v11 = vpop.permute.xlu1 %40  ;;  %v31_v12 = vpop.permute.xlu0 %30 }
  0x87   :  { %v46_v13 = vpop.permute.xlu1 %45  ;;  %v36_v14 = vpop.permute.xlu0 %35 }
  0x8c   :  { %v159_v15 = vpop.permute.xlu1 %158  ;;  %v155_v16 = vpop.permute.xlu0 %154 }
  0x90   :  { %v163_v30 = vpop.permute.xlu1 %162  ;;  %v167_v31 = vpop.permute.xlu0 %166 }
  0xc7   :  { %v227_v17 = vpop.f32.mrf.mxu0  ;;  %v230_v18 = vpop.f32.mrf.mxu1 }
  0xc8   :  { %v136_v19 = vadd.f32 %v227_v17, %v36_v14  ;;  %v146_v20 = vadd.f32 %v230_v18, %v46_v13 }
  0xc9   :  { %v130_v21 = vpop.f32.mrf.mxu0  ;;  %v140_v22 = vpop.f32.mrf.mxu1 }
  0xca   :  { %v150_v23 = vmax.f32 %v136_v19, 0.0  ;;  %v131_v24 = vadd.f32 %v130_v21, %v31_v12  ;;  %v141_v25 = vadd.f32 %v140_v22, %v41_v11  ;;  %v152_v27 = vmax.f32 %v146_v20, 0.0 }
  0xcc   :  { %v170_v26 = vmul.f32 %v159_v15, %v150_v23  ;;  %v149_v28 = vmax.f32 %v131_v24, 0.0  ;;  %v151_v29 = vmax.f32 %v141_v25, 0.0  ;;  %v172_v36 = vmul.f32 %v167_v31, %v152_v27 }
  0xce   :  { %v169_v32 = vmul.f32 %v155_v16, %v149_v28  ;;  %v171_v33 = vmul.f32 %v163_v30, %v151_v29  ;;  %v175_v34 = vsel %vm173_vm1, %v170_v26, 0.0  ;;  %v179_v40 = vsel %vm173_vm1, %v172_v36, 0.0 }
  0xd0   :  { %v174_v35 = vsel %vm173_vm1, %v169_v32, 0.0  ;;  %v177_v38 = vsel %vm173_vm1, %v171_v33, 0.0 }
  0xd1   :  { %v176_v37 = vadd.f32 %v175_v34, %v174_v35 }
  0xd3   :  { %v178_v39 = vadd.f32 %v177_v38, %v176_v37 }
  0xd5   :  { %v180_v41 = vadd.f32 %v179_v40, %v178_v39 }
  0xd7   :  { %v181_v42 = vrot.slane %v180_v41, 4 }
  0xd9   :  { %v182_v43 = vadd.f32 %v181_v42, %v180_v41 }
  0xdb   :  { %v183_v44 = vrot.slane %v182_v43, 2 }
  0xdd   :  { %v184_v45 = vadd.f32 %v183_v44, %v182_v43 }
  0xdf   :  { %v185_v46 = vrot.slane %v184_v45, 1 }
  0xe1   :  { %v186_v48 = vadd.f32 %v185_v46, %v184_v45 }
  0xe3   :  { %v189_v49 = vadd.f32 %v188_v47, %v186_v48 }
  0xe5   :  { %v217_v50 = vmul.f32 -1.442695, %v189_v49 }
  0xe7   :  { %240 = vpow2.f32 %v217_v50 }
  0xf4   :  { %v241_v51 = vpop.eup %240 }
  0xf5   :  { %v193_v52 = vadd.f32 1.0, %v241_v51 }
  0xf7   :  { %242 = vrcp.f32 %v193_v52 }
 0x104   :  { %v243_v53 = vpop.eup %242 }
 0x105   :  { %197 = vst.msk [vmem:[#allocation3] sm:$0x1] %vm196_vm2, %v243_v53 }
 0x106   :  { %255 = shalt.err (!%p252_p4)
}
 0x107   :  { %207 = dma.vmem_to_hbm [thread:$0]  %s205_s7, 16, %s339_s4, [#allocation4]  }
 0x108   :  { %264 = dma.done.wait [#allocation4], 16  }
 0x109   :  { %265 = vsyncadd [#allocation4], 4294967280 }
 0x10a   :  { %211 = vsyncpa [#allocation4], 1 }

</bundles_post_ra>
